<compile_context>
chip_gen: v5e
topology: v5e:2x2
jax: 0.10.0
libtpu: 0.0.40
codegen_flags: <defaults>
</compile_context>

<pallas_src>
import functools

import jax
import jax.numpy as jnp
from jax import lax
from jax.experimental import pallas as pl
from jax.experimental.pallas import tpu as pltpu

# Bounds the per-chunk (rows x tk) one-hot LHS temporary inside the dense kernel.
_LHS_CHUNK_ELEMS = 128 * 1024


def _round_up(x, m):
    return -(-x // m) * m


# ---------------------------------------------------------------------------
# Per-generation hardware knobs (v5e/v6e: 128 MiB VMEM, 1 TC; v7x: 64 MiB, 2 TC)
# ---------------------------------------------------------------------------
@functools.lru_cache(maxsize=None)
def _tpu_info():
    try:
        return pltpu.get_tpu_info()
    except Exception:
        return None


@functools.lru_cache(maxsize=None)
def _physical_vmem_bytes():
    info = _tpu_info()
    if info is not None:
        for attr in ("vmem_capacity_bytes", "vmem_bytes", "vmem_size_bytes"):
            v = getattr(info, attr, None)
            if isinstance(v, int) and v > 0:
                return int(v)
    return 64 * 1024 * 1024          # conservative fallback (v7x physical VMEM)


@functools.lru_cache(maxsize=None)
def _vmem_limit_bytes():
    # ~75% of physical VMEM, capped: ~96 MiB on v5e/v6e (128 MiB), 48 MiB on v7x.
    return int(min(_physical_vmem_bytes() * 3 // 4, 100 * 1024 * 1024))


@functools.lru_cache(maxsize=None)
def _data_budget_bytes():
    # Bytes the double-buffered pipeline blocks may occupy (headroom left for
    # in-kernel temporaries / spills).
    return int(min(_physical_vmem_bytes() * 2 // 5, 48 * 1024 * 1024))


@functools.lru_cache(maxsize=None)
def _num_tensorcores():
    info = _tpu_info()
    if info is not None:
        for attr in ("num_cores", "core_count", "cores_per_chip", "num_tensorcores"):
            v = getattr(info, attr, None)
            if isinstance(v, int) and v > 0:
                return max(1, min(int(v), 2))      # per-chip TensorCores (<= 2)
    try:
        if "v7" in jax.devices()[0].device_kind.lower():
            return 2
    except Exception:
        pass
    return 1


# ---------------------------------------------------------------------------
# Dense path: fused "scatter + gather + reduce" as one MXU matmul.
# LHS[b, u] = sum_k att_w[b,k] * (tem_adj[b,k] == u), built on the fly per tile.
# ---------------------------------------------------------------------------
def _dense_fused_kernel(adj_ref, w_ref, t_ref, o_ref, acc_ref):
    # adj_ref: (tm, K) int32   neighbor ids for this batch tile
    # w_ref  : (tm, K) f32     inf-masked attention weights
    # t_ref  : (tk, D)  bf16   rows [k*tk, (k+1)*tk) of the (row-padded) table
    # o_ref  : (tm, D)  f32
    # acc_ref: (tm, D)  f32    accumulator, resident across the k (table) axis
    k = pl.program_id(1)

    @pl.when(k == 0)
    def _init():
        acc_ref[...] = jnp.zeros_like(acc_ref)

    tm, K = adj_ref.shape
    tk = t_ref.shape[0]
    col0 = k * tk

    # Row-chunked build of the one-hot-weighted LHS so live temporaries stay
    # ~_LHS_CHUNK_ELEMS f32 elements; each chunk is fed straight to the MXU.
    chunk = max(8, (min(tm, _LHS_CHUNK_ELEMS // tk) // 8) * 8)
    for r0 in range(0, tm, chunk):
        ch = min(chunk, tm - r0)
        adj_c = adj_ref[pl.ds(r0, ch), :]                       # (ch, K) int32
        w_c = w_ref[pl.ds(r0, ch), :]                           # (ch, K) f32
        col_ids = col0 + lax.broadcasted_iota(jnp.int32, (ch, tk), 1)
        lhs = jnp.zeros((ch, tk), jnp.float32)
        for kk in range(K):                                     # K small: static unroll
            # duplicates in adj accumulate -> matches scatter-add / bmm semantics
            lhs = lhs + jnp.where(col_ids == adj_c[:, kk:kk + 1],
                                  w_c[:, kk:kk + 1], 0.0)
        acc_ref[pl.ds(r0, ch), :] += jnp.dot(
            lhs.astype(t_ref.dtype), t_ref[...],
            preferred_element_type=jnp.float32)

    @pl.when(k == pl.num_programs(1) - 1)
    def _store():
        o_ref[...] = acc_ref[...].astype(o_ref.dtype)


def _dense_agg_fused(tem_adj, att_w, table_bf16, *, tm=None, tk=None):
    """out[b] = sum_k att_w[b,k] * table[tem_adj[b,k]] via a fused one-hot MXU matmul."""
    B, K = tem_adj.shape
    U, D = table_bf16.shape
    if tm is None:
        tm = min(512, _round_up(B, 8))
    if tk is None:
        tk = min(1024, _round_up(U, 128))
    Bp = _round_up(B, tm)
    Up = _round_up(U, tk)
    if Bp != B:
        # padded rows: id 0 with weight 0 -> contribute nothing, sliced off below
        tem_adj = jnp.pad(tem_adj, ((0, Bp - B), (0, 0)))
        att_w = jnp.pad(att_w, ((0, Bp - B), (0, 0)))
    if Up != U:
        table_bf16 = jnp.pad(table_bf16, ((0, Up - U), (0, 0)))

    out = pl.pallas_call(
        _dense_fused_kernel,
        out_shape=jax.ShapeDtypeStruct((Bp, D), jnp.float32),
        grid_spec=pltpu.PrefetchScalarGridSpec(
            num_scalar_prefetch=0,
            grid=(Bp // tm, Up // tk),
            in_specs=[
                pl.BlockSpec((tm, K), lambda i, k: (i, 0)),
                pl.BlockSpec((tm, K), lambda i, k: (i, 0)),
                pl.BlockSpec((tk, D), lambda i, k: (k, 0)),
            ],
            out_specs=pl.BlockSpec((tm, D), lambda i, k: (i, 0)),
            scratch_shapes=[pltpu.VMEM((tm, D), jnp.float32)],
        ),
        compiler_params=pltpu.CompilerParams(
            dimension_semantics=("parallel", "arbitrary"),
            vmem_limit_bytes=_vmem_limit_bytes()),
    )(tem_adj, att_w, table_bf16)
    return out[:B]


# ---------------------------------------------------------------------------
# Streaming path: weighted reduction over K, per-neighbor accumulation.
# ---------------------------------------------------------------------------
def _stream_agg_kernel(e_ref, na_ref, nb_ref, o_ref):
    # e_ref : (K, tb, D) bf16  neighbor embeddings for this batch tile
    # na_ref: (tb, 1)    f32   degree of each center node
    # nb_ref: (tb, K)    f32   degree of each neighbor
    # o_ref : (tb, D)    f32   aggregated output
    na = na_ref[...]
    nb = nb_ref[...]
    # 1/(sqrt(na)*sqrt(nb)) == rsqrt(na*nb); valid because degree products are
    # tiny (no overflow).  inf (zero degree / padded rows) -> 0.
    w = lax.rsqrt(na * nb)                               # (tb, K)
    w = jnp.where(jnp.isinf(w), 0.0, w)

    acc = jnp.zeros(o_ref.shape, jnp.float32)
    for kk in range(e_ref.shape[0]):                     # K small: static unroll,
        acc = acc + e_ref[kk].astype(jnp.float32) * w[:, kk:kk + 1]   # per-slice cast
    o_ref[...] = acc.astype(o_ref.dtype)


def _pick_batch_tile(B, K, D, e_dtype):
    """Largest batch tile whose double-buffered pipeline blocks fit the budget."""
    itemsize = jnp.dtype(e_dtype).itemsize
    # Batch maps to sublanes (no padding waste); D is lane-padded to 128.
    e_row = K * _round_up(D, 128) * itemsize
    aux_row = (128 + _round_up(K, 128) + _round_up(D, 128)) * 4   # N_a, N_b, out
    per_row = e_row + aux_row
    tb = _data_budget_bytes() // (2 * per_row)           # x2: double buffering
    tb = max(8, min((int(tb) // 8) * 8, 1024))           # >=512 rows ~ HBM roofline
    tb = min(tb, _round_up(B, 8))                        # don't tile past the batch
    ncores = _num_tensorcores()
    if ncores > 1 and B > 8:
        # v7x only: keep >= ncores grid steps so "parallel" shards across both TCs.
        tb = min(tb, max(8, _round_up(-(-B // ncores), 8)))
    return tb


def _stream_aggregate(e_u, N_a, N_b, *, tb=None):
    K, B, D = e_u.shape
    if tb is None:
        tb = _pick_batch_tile(B, K, D, e_u.dtype)
    Bp = _round_up(B, tb)
    pad = Bp - B
    if pad:
        # padded rows: N_a = N_b = 0 -> att_w = inf -> masked to 0 -> output row 0
        e_u = jnp.pad(e_u, ((0, 0), (0, pad), (0, 0)))
        N_a = jnp.pad(N_a, ((0, pad), (0, 0)))
        N_b = jnp.pad(N_b, ((0, pad), (0, 0)))

    out = pl.pallas_call(
        _stream_agg_kernel,
        out_shape=jax.ShapeDtypeStruct((Bp, D), jnp.float32),
        grid_spec=pltpu.PrefetchScalarGridSpec(
            num_scalar_prefetch=0,
            grid=(Bp // tb,),
            in_specs=[
                pl.BlockSpec((K, tb, D), lambda i: (0, i, 0)),
                pl.BlockSpec((tb, 1), lambda i: (i, 0)),
                pl.BlockSpec((tb, K), lambda i: (i, 0)),
            ],
            out_specs=pl.BlockSpec((tb, D), lambda i: (i, 0)),
        ),
        compiler_params=pltpu.CompilerParams(
            dimension_semantics=("parallel",),
            vmem_limit_bytes=_vmem_limit_bytes()),
    )(e_u, N_a, N_b)
    return out[:B]


# ---------------------------------------------------------------------------
# Path choice: rough per-forward time model (generation-agnostic constants).
# ---------------------------------------------------------------------------
def _dense_is_cheaper(B, K, D, U, tm):
    HBM = 1.2e12      # bytes/s
    VPU = 4.0e12      # elementwise ops/s
    MXU = 2.0e14      # flop/s (bf16)
    Up = _round_up(U, 128)
    n_itiles = -(-B // tm)
    dense_t = ((n_itiles * Up * D * 2 + B * K * 8 + B * D * 4) / HBM   # table re-reads
               + (B * Up * K * 3.0) / VPU                              # fused LHS build
               + (2.0 * B * Up * D) / MXU)                             # MXU work
    stream_t = (2 * B * K * D * 2 + U * D * 2 + B * K * 8 + B * D * 4) / HBM
    return dense_t <= stream_t


# ---------------------------------------------------------------------------
# Top-level forward (matches Social_Aggregator.forward(nodes)).
# ---------------------------------------------------------------------------
@functools.partial(jax.jit, static_argnames=("use_dense",))
def _forward_jit(nodes, table_bf16, u_u, u_u_l, *, use_dense=None):
    U, D = table_bf16.shape
    tem_adj = u_u[nodes].astype(jnp.int32)                  # (B, K)
    B, K = tem_adj.shape
    N_a = u_u_l[nodes].astype(jnp.float32)                  # (B, 1)
    N_b = u_u_l[tem_adj][..., 0].astype(jnp.float32)        # (B, K)  (.squeeze(2))

    tm = min(512, _round_up(B, 8))
    if use_dense is None:
        use_dense = _dense_is_cheaper(B, K, D, U, tm)

    if use_dense:
        att_w = lax.rsqrt(N_a * N_b)                        # == 1/(sqrt(N_a)*sqrt(N_b))
        att_w = jnp.where(jnp.isinf(att_w), 0.0, att_w)     # inf -> 0
        return _dense_agg_fused(tem_adj, att_w, table_bf16, tm=tm)

    # Streaming path: the row gather stays XLA-side (see TODO at top) but in
    # (K, B, D) layout so the Pallas kernel slices the leading axis per neighbor;
    # att math + K-reduction run in Pallas with a VMEM-budgeted batch tile.
    e_u = table_bf16[tem_adj.T]                             # (K, B, D) bf16
    return _stream_aggregate(e_u, N_a, N_b)


def social_aggregator_forward(nodes, u2e_weight, u_u, u_u_l, *, use_dense=None):
    """Functional API: casts the table to bf16 per call (prefer make_social_aggregator)."""
    return _forward_jit(nodes, u2e_weight.astype(jnp.bfloat16), u_u, u_u_l,
                        use_dense=use_dense)


def make_social_aggregator(u2e_weight, u_u, u_u_l):
    """Mirrors Social_Aggregator(u2e, u_u, u_u_l); bf16 table cast hoisted to setup."""
    table_bf16 = u2e_weight.astype(jnp.bfloat16)

    def forward(nodes, *, use_dense=None):
        return _forward_jit(nodes, table_bf16, u_u, u_u_l, use_dense=use_dense)

    return forward


def _reference(nodes, u2e_weight, u_u, u_u_l):
    """Pure-JAX f32 reference with identical semantics (for verification)."""
    tem_adj = u_u[nodes]
    e_u = u2e_weight[tem_adj]
    N_a = u_u_l[nodes]
    N_b = u_u_l[tem_adj][..., 0]
    w = 1.0 / (jnp.sqrt(N_a) * jnp.sqrt(N_b))
    w = jnp.where(jnp.isinf(w), 0.0, w)
    return jnp.einsum("bkd,bk->bd", e_u, w)


if __name__ == "__main__":
    # Small, deterministic synthetic "module state" (no checkpoint loading).
    num_users = 40   # embedding table rows
    D = 32           # embed_dim
    K = 8            # max social neighbors per user
    B = 6            # batch of query nodes (non multiple of 8 -> exercises padding)

    key = jax.random.PRNGKey(0)
    k_w, k_adj, k_deg = jax.random.split(key, 3)
    u2e_weight = jax.random.normal(k_w, (num_users, D), dtype=jnp.float32)
    u_u = jax.random.randint(k_adj, (num_users, K), 0, num_users, dtype=jnp.int32)
    # neighbor counts; include zeros so the inf -> 0 masking path is exercised
    u_u_l = jax.random.randint(k_deg, (num_users, 1), 0, K + 1).astype(jnp.float32)
    nodes = jnp.array([3, 7, 0, 11, 25, 39], dtype=jnp.int32)

    ref = _reference(nodes, u2e_weight, u_u, u_u_l)
    forward = make_social_aggregator(u2e_weight, u_u, u_u_l)

    out_auto = jax.block_until_ready(forward(nodes))
    out_dense = jax.block_until_ready(forward(nodes, use_dense=True))
    out_stream = jax.block_until_ready(forward(nodes, use_dense=False))

    for name, out in (("auto", out_auto), ("dense", out_dense), ("stream", out_stream)):
        assert out.shape == (B, D), (name, out.shape)
        # bf16 table -> slightly loosened tolerance vs f32 reference
        assert jnp.allclose(out, ref, atol=5e-2, rtol=5e-2), f"{name} path mismatch"

    # ---- multi-tile / padding check with tiny forced tiles -------------------
    U2, B2 = 300, 20
    k2w, k2a, k2d, k2n = jax.random.split(jax.random.PRNGKey(1), 4)
    table2 = jax.random.normal(k2w, (U2, D), dtype=jnp.float32)
    adj2 = jax.random.randint(k2a, (B2, K), 0, U2, dtype=jnp.int32)
    na2 = jax.random.randint(k2d, (B2, 1), 0, K + 1).astype(jnp.float32)
    nb2 = jax.random.randint(k2n, (B2, K), 0, K + 1).astype(jnp.float32)
    att2 = lax.rsqrt(na2 * nb2)
    att2 = jnp.where(jnp.isinf(att2), 0.0, att2)
    ref2 = jnp.einsum("bkd,bk->bd", table2[adj2], att2)

    table2_bf16 = table2.astype(jnp.bfloat16)
    dense2 = jax.block_until_ready(
        _dense_agg_fused(adj2, att2, table2_bf16, tm=8, tk=128))     # grid (3, 3)
    stream2 = jax.block_until_ready(
        _stream_aggregate(table2_bf16[adj2.T], na2, nb2, tb=8))      # grid (3,)
    assert dense2.shape == (B2, D) and stream2.shape == (B2, D)
    assert jnp.allclose(dense2, ref2, atol=5e-2, rtol=5e-2), "dense multi-tile mismatch"
    assert jnp.allclose(stream2, ref2, atol=5e-2, rtol=5e-2), "stream multi-tile mismatch"

    print("KERNEL_OK")
</pallas_src>

<mosaic_0001>
module attributes {stable_mosaic.version = 11 : i64} {
  func.func @_stream_agg_kernel(%arg0: i32, %arg1: memref<8x8x32xbf16, #tpu.memory_space<vmem>>, %arg2: memref<8x1xf32, #tpu.memory_space<vmem>>, %arg3: memref<8x8xf32, #tpu.memory_space<vmem>>, %arg4: memref<8x32xf32, #tpu.memory_space<vmem>>) attributes {dimension_semantics = [#tpu.dimension_semantics<parallel>], iteration_bounds = array<i64: 1>, scalar_prefetch = 0 : i64, scratch_operands = 0 : i64, tpu.core_type = #tpu.core_type<tc>, window_params = [{transform_indices = @transform_0, window_bounds = array<i64: 8, 8, 32>}, {transform_indices = @transform_1, window_bounds = array<i64: 8, 1>}, {transform_indices = @transform_2, window_bounds = array<i64: 8, 8>}, {transform_indices = @transform_3, window_bounds = array<i64: 8, 32>}]} {
    %c0 = arith.constant 0 : index
    %c0_0 = arith.constant 0 : index
    %0 = vector.load %arg2[%c0, %c0_0] : memref<8x1xf32, #tpu.memory_space<vmem>>, vector<8x1xf32>
    %c0_1 = arith.constant 0 : index
    %c0_2 = arith.constant 0 : index
    %1 = vector.load %arg3[%c0_1, %c0_2] : memref<8x8xf32, #tpu.memory_space<vmem>>, vector<8x8xf32>
    %2 = vector.broadcast %0 : vector<8x1xf32> to vector<8x8xf32>
    %3 = arith.mulf %2, %1 : vector<8x8xf32>
    %4 = math.rsqrt %3 : vector<8x8xf32>
    %5 = math.absf %4 : vector<8x8xf32>
    %cst = arith.constant 0x7F800000 : f32
    %6 = vector.broadcast %cst : f32 to vector<8x8xf32>
    %7 = arith.cmpf oeq, %5, %6 : vector<8x8xf32>
    %cst_3 = arith.constant 0.000000e+00 : f32
    %8 = vector.broadcast %cst_3 : f32 to vector<8x8xf32>
    %9 = arith.select %7, %8, %4 : vector<8x8xi1>, vector<8x8xf32>
    %cst_4 = arith.constant 0.000000e+00 : f32
    %10 = vector.broadcast %cst_4 : f32 to vector<8x32xf32>
    %c0_5 = arith.constant 0 : index
    %c0_6 = arith.constant 0 : index
    %c0_7 = arith.constant 0 : index
    %11 = vector.load %arg1[%c0_5, %c0_6, %c0_7] : memref<8x8x32xbf16, #tpu.memory_space<vmem>>, vector<1x8x32xbf16>
    %12 = vector.shape_cast %11 : vector<1x8x32xbf16> to vector<8x32xbf16>
    %13 = arith.extf %12 : vector<8x32xbf16> to vector<8x32xf32>
    %14 = vector.extract_strided_slice %9 {offsets = [0, 0], sizes = [8, 1], strides = [1, 1]} : vector<8x8xf32> to vector<8x1xf32>
    %15 = vector.broadcast %14 : vector<8x1xf32> to vector<8x32xf32>
    %16 = arith.mulf %13, %15 : vector<8x32xf32>
    %17 = arith.addf %10, %16 : vector<8x32xf32>
    %c1 = arith.constant 1 : index
    %c0_8 = arith.constant 0 : index
    %c0_9 = arith.constant 0 : index
    %18 = vector.load %arg1[%c1, %c0_8, %c0_9] : memref<8x8x32xbf16, #tpu.memory_space<vmem>>, vector<1x8x32xbf16>
    %19 = vector.shape_cast %18 : vector<1x8x32xbf16> to vector<8x32xbf16>
    %20 = arith.extf %19 : vector<8x32xbf16> to vector<8x32xf32>
    %21 = vector.extract_strided_slice %9 {offsets = [0, 1], sizes = [8, 1], strides = [1, 1]} : vector<8x8xf32> to vector<8x1xf32>
    %22 = vector.broadcast %21 : vector<8x1xf32> to vector<8x32xf32>
    %23 = arith.mulf %20, %22 : vector<8x32xf32>
    %24 = arith.addf %17, %23 : vector<8x32xf32>
    %c2 = arith.constant 2 : index
    %c0_10 = arith.constant 0 : index
    %c0_11 = arith.constant 0 : index
    %25 = vector.load %arg1[%c2, %c0_10, %c0_11] : memref<8x8x32xbf16, #tpu.memory_space<vmem>>, vector<1x8x32xbf16>
    %26 = vector.shape_cast %25 : vector<1x8x32xbf16> to vector<8x32xbf16>
    %27 = arith.extf %26 : vector<8x32xbf16> to vector<8x32xf32>
    %28 = vector.extract_strided_slice %9 {offsets = [0, 2], sizes = [8, 1], strides = [1, 1]} : vector<8x8xf32> to vector<8x1xf32>
    %29 = vector.broadcast %28 : vector<8x1xf32> to vector<8x32xf32>
    %30 = arith.mulf %27, %29 : vector<8x32xf32>
    %31 = arith.addf %24, %30 : vector<8x32xf32>
    %c3 = arith.constant 3 : index
    %c0_12 = arith.constant 0 : index
    %c0_13 = arith.constant 0 : index
    %32 = vector.load %arg1[%c3, %c0_12, %c0_13] : memref<8x8x32xbf16, #tpu.memory_space<vmem>>, vector<1x8x32xbf16>
    %33 = vector.shape_cast %32 : vector<1x8x32xbf16> to vector<8x32xbf16>
    %34 = arith.extf %33 : vector<8x32xbf16> to vector<8x32xf32>
    %35 = vector.extract_strided_slice %9 {offsets = [0, 3], sizes = [8, 1], strides = [1, 1]} : vector<8x8xf32> to vector<8x1xf32>
    %36 = vector.broadcast %35 : vector<8x1xf32> to vector<8x32xf32>
    %37 = arith.mulf %34, %36 : vector<8x32xf32>
    %38 = arith.addf %31, %37 : vector<8x32xf32>
    %c4 = arith.constant 4 : index
    %c0_14 = arith.constant 0 : index
    %c0_15 = arith.constant 0 : index
    %39 = vector.load %arg1[%c4, %c0_14, %c0_15] : memref<8x8x32xbf16, #tpu.memory_space<vmem>>, vector<1x8x32xbf16>
    %40 = vector.shape_cast %39 : vector<1x8x32xbf16> to vector<8x32xbf16>
    %41 = arith.extf %40 : vector<8x32xbf16> to vector<8x32xf32>
    %42 = vector.extract_strided_slice %9 {offsets = [0, 4], sizes = [8, 1], strides = [1, 1]} : vector<8x8xf32> to vector<8x1xf32>
    %43 = vector.broadcast %42 : vector<8x1xf32> to vector<8x32xf32>
    %44 = arith.mulf %41, %43 : vector<8x32xf32>
    %45 = arith.addf %38, %44 : vector<8x32xf32>
    %c5 = arith.constant 5 : index
    %c0_16 = arith.constant 0 : index
    %c0_17 = arith.constant 0 : index
    %46 = vector.load %arg1[%c5, %c0_16, %c0_17] : memref<8x8x32xbf16, #tpu.memory_space<vmem>>, vector<1x8x32xbf16>
    %47 = vector.shape_cast %46 : vector<1x8x32xbf16> to vector<8x32xbf16>
    %48 = arith.extf %47 : vector<8x32xbf16> to vector<8x32xf32>
    %49 = vector.extract_strided_slice %9 {offsets = [0, 5], sizes = [8, 1], strides = [1, 1]} : vector<8x8xf32> to vector<8x1xf32>
    %50 = vector.broadcast %49 : vector<8x1xf32> to vector<8x32xf32>
    %51 = arith.mulf %48, %50 : vector<8x32xf32>
    %52 = arith.addf %45, %51 : vector<8x32xf32>
    %c6 = arith.constant 6 : index
    %c0_18 = arith.constant 0 : index
    %c0_19 = arith.constant 0 : index
    %53 = vector.load %arg1[%c6, %c0_18, %c0_19] : memref<8x8x32xbf16, #tpu.memory_space<vmem>>, vector<1x8x32xbf16>
    %54 = vector.shape_cast %53 : vector<1x8x32xbf16> to vector<8x32xbf16>
    %55 = arith.extf %54 : vector<8x32xbf16> to vector<8x32xf32>
    %56 = vector.extract_strided_slice %9 {offsets = [0, 6], sizes = [8, 1], strides = [1, 1]} : vector<8x8xf32> to vector<8x1xf32>
    %57 = vector.broadcast %56 : vector<8x1xf32> to vector<8x32xf32>
    %58 = arith.mulf %55, %57 : vector<8x32xf32>
    %59 = arith.addf %52, %58 : vector<8x32xf32>
    %c7 = arith.constant 7 : index
    %c0_20 = arith.constant 0 : index
    %c0_21 = arith.constant 0 : index
    %60 = vector.load %arg1[%c7, %c0_20, %c0_21] : memref<8x8x32xbf16, #tpu.memory_space<vmem>>, vector<1x8x32xbf16>
    %61 = vector.shape_cast %60 : vector<1x8x32xbf16> to vector<8x32xbf16>
    %62 = arith.extf %61 : vector<8x32xbf16> to vector<8x32xf32>
    %63 = vector.extract_strided_slice %9 {offsets = [0, 7], sizes = [8, 1], strides = [1, 1]} : vector<8x8xf32> to vector<8x1xf32>
    %64 = vector.broadcast %63 : vector<8x1xf32> to vector<8x32xf32>
    %65 = arith.mulf %62, %64 : vector<8x32xf32>
    %66 = arith.addf %59, %65 : vector<8x32xf32>
    %c0_22 = arith.constant 0 : index
    %c0_23 = arith.constant 0 : index
    %67 = vector.load %arg4[%c0_22, %c0_23] : memref<8x32xf32, #tpu.memory_space<vmem>>, vector<8x32xf32>
    tpu.vector_store %arg4[%c0_22, %c0_23], %66 {strides = array<i32>} : memref<8x32xf32, #tpu.memory_space<vmem>>, vector<8x32xf32>,
    return
  }
  func.func @transform_0(%arg0: i32) -> (i32, i32, i32) {
    %c0_i32 = arith.constant 0 : i32
    %c0_i32_0 = arith.constant 0 : i32
    %c0_i32_1 = arith.constant 0 : i32
    return %c0_i32, %arg0, %c0_i32_0 : i32, i32, i32
  }
  func.func @transform_1(%arg0: i32) -> (i32, i32) {
    %c0_i32 = arith.constant 0 : i32
    %c0_i32_0 = arith.constant 0 : i32
    return %arg0, %c0_i32 : i32, i32
  }
  func.func @transform_2(%arg0: i32) -> (i32, i32) {
    %c0_i32 = arith.constant 0 : i32
    %c0_i32_0 = arith.constant 0 : i32
    return %arg0, %c0_i32 : i32, i32
  }
  func.func @transform_3(%arg0: i32) -> (i32, i32) {
    %c0_i32 = arith.constant 0 : i32
    %c0_i32_0 = arith.constant 0 : i32
    return %arg0, %c0_i32 : i32, i32
  }
}

</mosaic_0001>

<bundles_post_ra>
// kernel: squeeze.1
= control target key start
LH: loop header
LB: loop body
LE: loop exit
PB: predicated region body
PF: predicated region fallthrough
CT: control target
= control target key end

     0   :  { %s50_s8 = smov 120   ;;  %s51_s9 = smov 88   ;;  %vm7_vm0 = vcmask 64512   ;;  %s85_s0 = inlined_call_operand.vmem [shape: f32[48], index: 0, kind: input, shape index: {}]   ;;  %s86_s1 = inlined_call_operand.vmem [shape: f32[6,8], index: 1, kind: output, shape index: {}]  }
   0x1   :  { %v4_v0 = vld [vmem:[%s85_s0] sm:$0x1]  ;;  %s49_s0 = smov 104   ;;  %s52_s10 = smov 96  }
   0x2   :  { %5 = vst [vmem:[#allocation0] sm:$0x1] %v4_v0  ;;  %s53_s11 = smov 112  }
   0x9   :  { %v21_v1 = vld [vmem:[#allocation0] sm:$0x1]  }
   0xa   :  { %v9_v2 = vld [vmem:[#allocation0] sm:$0x1]   ;;  %22 = vrot.lane.b32.xlu1 %v21_v1, %s49_s0 }
   0xb   :  { %10 = vrot.lane.b32.xlu0 %v9_v2, %s50_s8  ;;  %v33_v3 = vld [vmem:[#allocation0] sm:$0x1]  }
   0xc   :  { %34 = vrot.lane.b32.xlu2 %v33_v3, %s51_s9  ;;  %v27_v4 = vld [vmem:[#allocation0] sm:$0x1]  }
   0xd   :  { %v15_v5 = vld [vmem:[#allocation0] sm:$0x1]  }
   0xe   :  { %v6_v6 = vld [vmem:[#allocation0] sm:$0x1]  }
   0xf   :  { %8 = vst.msk [vmem:[%s86_s1] sm:$0x1] %vm7_vm0, %v6_v6  }
  0x12   :  { %28 = vrot.lane.b32.xlu1 %v27_v4, %s52_s10 }
  0x13   :  { %16 = vrot.lane.b32.xlu0 %v15_v5, %s53_s11 }
  0x66   :  { %v35_v7 = vpop.permute.xlu2 %34  }
  0x67   :  { %43 = vst.msk [vmem:[%s86_s1 + $0x5] sm:$0x1] %vm7_vm0, %v35_v7  }
  0x7c   :  { %v23_v8 = vpop.permute.xlu1 %22  }
  0x7d   :  { %v11_v9 = vpop.permute.xlu0 %10   ;;  %41 = vst.msk [vmem:[%s86_s1 + $0x3] sm:$0x1] %vm7_vm0, %v23_v8  }
  0x7e   :  { %39 = vst.msk [vmem:[%s86_s1 + $0x1] sm:$0x1] %vm7_vm0, %v11_v9  }
  0x84   :  { %v29_v10 = vpop.permute.xlu1 %28  }
  0x85   :  { %v17_v11 = vpop.permute.xlu0 %16   ;;  %42 = vst.msk [vmem:[%s86_s1 + $0x4] sm:$0x1] %vm7_vm0, %v29_v10  }
  0x86   :  { %40 = vst.msk [vmem:[%s86_s1 + $0x2] sm:$0x1] %vm7_vm0, %v17_v11  }

// kernel: _forward_jit.1
= control target key start
LH: loop header
LB: loop body
LE: loop exit
PB: predicated region body
PF: predicated region fallthrough
CT: control target
= control target key end

     0   :  { %s232_s0 = inlined_call_operand.vmem [shape: bf16[8,8,32], index: 0, kind: input, shape index: {}]   ;;  %s233_s1 = inlined_call_operand.vmem [shape: f32[8,1], index: 1, kind: input, shape index: {}]   ;;  %s234_s2 = inlined_call_operand.vmem [shape: f32[8,8], index: 2, kind: input, shape index: {}]   ;;  %s235_s3 = inlined_call_operand.hbm [shape: f32[8,32], index: 3, kind: output, shape index: {}]  }
   0x1   :  { %v15_v0 = vld [vmem:[%s233_s1] sm:$0xff] }
   0x2   :  { %8 = vsyncpa [#allocation3], 0  ;;  %v179_v1 = vmov 0   ;;  %v180_v2 = vmov 3   ;;  %v181_v3 = vmov 1   ;;  %v16_v4 = vld [vmem:[%s234_s2] sm:$0xff] }
   0x3   :  { %142 = vset.pattern.permute.xlu0 %v179_v1  ;;  %145 = vset.pattern.permute.xlu2 %v180_v2  ;;  %v182_v16 = vmov 4   ;;  %v183_v17 = vmov 2   ;;  %v184_v18 = vmov 5   ;;  %v185_v19 = vmov 7   ;;  %v126_v22 = vld [vmem:[%s232_s0 + $0x4] sm:$0xff]   ;;  %v128_v28 = vld [vmem:[%s232_s0 + $0xc] sm:$0xff]  }
   0x4   :  { %19 = vperm.xlu0 %142, %v15_v0   ;;  %143 = vset.pattern.permute.xlu1 %v181_v3  ;;  %v186_v20 = vmov 6   ;;  %v36_v24 = vld [vmem:[%s232_s0] sm:$0xf]  ;;  %v47_v25 = vunpack.c.l.bf16 %v126_v22  ;;  %v56_v31 = vunpack.c.h.bf16 %v126_v22  ;;  %v65_v32 = vunpack.c.l.bf16 %v128_v28  ;;  %v130_v35 = vld [vmem:[%s232_s0 + $0x14] sm:$0xff]   ;;  %v132_v44 = vld [vmem:[%s232_s0 + $0x1c] sm:$0xf] }
   0x5   :  { %v37_v26 = vunpack.c.l.bf16 %v36_v24  ;;  %v74_v36 = vunpack.c.h.bf16 %v128_v28  ;;  %v83_v41 = vunpack.c.l.bf16 %v130_v35  ;;  %v92_v46 = vunpack.c.h.bf16 %v130_v35  ;;  %s187_s24 = smov [#allocation2]   ;;  %s117_s28 = sshll.u32 %s235_s3, 4  ;;  %s118_s28 = int_to_ptr.hbm [resolvable:$true] %s117_s28 }
   0x6   :  { %v101_v49 = vunpack.c.l.bf16 %v132_v44  ;;  %s115_s25 = sshll.u32 %s187_s24, 4  ;;  %vm108_vm4 = vcmask 261120   ;;  %s116_s25 = int_to_ptr.vmem [resolvable:$true] %s115_s25 }
  0x76   :  { %v20_v5 = vpop.permute.xlu0 %19 }
  0x77   :  { %v22_v6 = vmul.f32 %v20_v5, %v16_v4 }
  0x79   :  { %151 = vrsqrt.f32 %v22_v6  ;;  %vm29_vm1 = vweird.f32 %v22_v6 }
  0x7f   :  { %v152_v7 = vpop.eup %151 }
  0x80   :  { %v24_v8 = vmul.f32 %v152_v7, %v22_v6  ;;  %vm30_vm0 = vweird.f32 %v152_v7 }
  0x81   :  { %vm31_vm2 = vmor %vm29_vm1, %vm30_vm0 }
  0x82   :  { %v25_v9 = vmul.f32 %v152_v7, %v24_v8 }
  0x84   :  { %v26_v10 = vmul.f32 0.5, %v25_v9 }
  0x86   :  { %v27_v11 = vsub.f32 1.5, %v26_v10 }
  0x88   :  { %v28_v12 = vmul.f32 %v152_v7, %v27_v11 }
  0x8a   :  { %v32_v13 = vsel %vm31_vm2, %v152_v7, %v28_v12 }
  0x8b   :  { %v33_v14 = vand.u32 2147483647, %v32_v13 }
  0x8d   :  { %vm34_vm3 = vcmp.eq.f32.partialorder %v33_v14, inf }
  0x8e   :  { %v35_v15 = vsel %vm34_vm3, 0.0, %v32_v13 }
  0x8f   :  { %67 = vperm.xlu2 %145, %v35_v15   ;;  %49 = vperm.xlu1 %143, %v35_v15  }
  0x90   :  { %40 = vperm.xlu0 %142, %v35_v15  }
  0x97   :  { %146 = vset.pattern.permute.xlu2 %v182_v16  ;;  %144 = vset.pattern.permute.xlu1 %v183_v17 }
  0x98   :  { %147 = vset.pattern.permute.xlu0 %v184_v18  ;;  %76 = vperm.xlu2 %146, %v35_v15  }
  0x99   :  { %58 = vperm.xlu1 %144, %v35_v15   ;;  %85 = vperm.xlu0 %147, %v35_v15  }
  0xa0   :  { %149 = vset.pattern.permute.xlu2 %v185_v19 }
  0xa1   :  { %148 = vset.pattern.permute.xlu1 %v186_v20  ;;  %103 = vperm.xlu2 %149, %v35_v15  }
  0xa2   :  { %94 = vperm.xlu1 %148, %v35_v15   ;;  %150 = vset.pattern.permute.xlu0 %v185_v19 }
  0xe9   :  { %v68_v21 = vpop.permute.xlu2 %67 }
  0xea   :  { %v70_v39 = vmul.f32 %v68_v21, %v65_v32 }
  0xf2   :  { %v77_v33 = vpop.permute.xlu2 %76 }
  0xf3   :  { %v79_v43 = vmul.f32 %v77_v33, %v74_v36 }
  0xfb   :  { %v104_v50 = vpop.permute.xlu2 %103 }
  0xfc   :  { %v106_v54 = vmul.f32 %v104_v50, %v101_v49 }
 0x101   :  { %v50_v23 = vpop.permute.xlu1 %49 }
 0x102   :  { %v41_v27 = vpop.permute.xlu0 %40  ;;  %v52_v29 = vmul.f32 %v50_v23, %v47_v25 }
 0x103   :  { %v43_v30 = vmul.f32 %v41_v27, %v37_v26 }
 0x105   :  { %v53_v37 = vadd.f32 %v52_v29, %v43_v30 }
 0x10b   :  { %v59_v34 = vpop.permute.xlu1 %58  ;;  %v86_v42 = vpop.permute.xlu0 %85 }
 0x10c   :  { %v61_v38 = vmul.f32 %v59_v34, %v56_v31  ;;  %v88_v48 = vmul.f32 %v86_v42, %v83_v41 }
 0x10e   :  { %v62_v40 = vadd.f32 %v61_v38, %v53_v37 }
 0x110   :  { %v71_v45 = vadd.f32 %v70_v39, %v62_v40 }
 0x112   :  { %v80_v47 = vadd.f32 %v79_v43, %v71_v45 }
 0x114   :  { %v89_v51 = vadd.f32 %v88_v48, %v80_v47  ;;  %v95_v52 = vpop.permute.xlu1 %94 }
 0x115   :  { %v97_v53 = vmul.f32 %v95_v52, %v92_v46 }
 0x117   :  { %v98_v55 = vadd.f32 %v97_v53, %v89_v51 }
 0x119   :  { %v107_v56 = vadd.f32 %v106_v54, %v98_v55 }
 0x11b   :  { %109 = vst.msk [vmem:[#allocation2] sm:$0xff] %vm108_vm4, %v107_v56 }
 0x11c   :  { %120 = dma.vmem_to_hbm [thread:$0]  %s116_s25, 128, %s118_s28, [#allocation3]  }
 0x11d   :  { %177 = dma.done.wait [#allocation3], 128  }
 0x11e   :  { %178 = vsyncadd [#allocation3], 4294967168 }
 0x11f   :  { %125 = vsyncpa [#allocation3], 1 }

</bundles_post_ra>
